<compile_context>
chip_gen: v5e
topology: v5e:2x2
jax: 0.10.0
libtpu: 0.0.40
codegen_flags: <defaults>
</compile_context>

<pallas_src>
import functools

import jax
import jax.numpy as jnp
from jax.experimental import pallas as pl
from jax.experimental.pallas import tpu as pltpu


def _make_kernel(n_features):
    def kernel(x_ref, w_ref, b_ref, o_ref, acc_ref):
        # x_ref: (TM, TF) VMEM (native dtype), w_ref: (1, TF) VMEM f32,
        # b_ref: (1, 1) SMEM f32, o_ref: (TM, 1) VMEM f32, acc_ref: (TM, 1) f32.
        k = pl.program_id(1)

        @pl.when(k == 0)
        def _():
            acc_ref[...] = jnp.zeros_like(acc_ref)

        x = x_ref[...].astype(jnp.float32)   # in-vreg upcast (VALU slack; free)
        w = w_ref[...]
        prod = x * w                         # VPU

        tf = prod.shape[-1]
        if n_features % tf != 0:
            # Ragged last feature block: zero lanes past the true feature dim
            # so undefined x/w data never reaches the accumulator.
            lane = jax.lax.broadcasted_iota(jnp.int32, prod.shape, 1)
            prod = jnp.where(k * tf + lane < n_features, prod, 0.0)

        acc_ref[...] += jnp.sum(prod, axis=-1, keepdims=True)   # XLU lane reduce

        @pl.when(k == pl.num_programs(1) - 1)
        def _():
            z = acc_ref[...] + b_ref[0, 0]
            o_ref[...] = jax.nn.sigmoid(z).astype(o_ref.dtype)  # EUP

    return kernel


def _pick_tiles(batch, n_features, itemsize):
    """Pick (tm, tf) so the streamed x tile is ~4 MiB (≈85% of HBM roofline
    per measured data), tm is a multiple of 8 (128 when large), and large
    batches keep >=2 grid steps for the 2 TensorCores on v7x."""
    target = 4 * 1024 * 1024                      # bytes per x tile (2x-buffered)
    b8 = max(8, -(-batch // 8) * 8)               # batch rounded up to sublanes

    rows = target // max(n_features * itemsize, 1)
    if rows < 8:
        # Very wide features: tile the feature (reduction) axis too.
        tm = min(128, b8)
        tf = max(128, (target // (tm * itemsize)) // 128 * 128)
        tf = min(tf, -(-n_features // 128) * 128)
        return tm, tf

    tf = n_features
    tm = (rows // 128) * 128 if rows >= 128 else (rows // 8) * 8
    tm = max(8, tm)
    if tm >= b8:
        tm = b8
        if b8 >= 256:
            # Keep >=2 batch tiles so the "parallel" axis can shard across TCs.
            tm = -(-(b8 // 2) // 128) * 128
    return tm, tf


@functools.partial(jax.jit, static_argnames=("tm", "tf"))
def logreg_forward(x, weight, bias, *, tm=None, tf=None):
    """x: (B, F) (any float dtype; streamed natively), weight: (1, F),
    bias: (1,) -> sigmoid(x @ weight.T + bias), shape (B, 1) f32."""
    B, F = x.shape
    w = weight.reshape(1, F).astype(jnp.float32)   # lane-dense, tiny, resident
    b = bias.reshape(1, 1).astype(jnp.float32)     # scalar in SMEM

    itemsize = jnp.dtype(x.dtype).itemsize
    auto_tm, auto_tf = _pick_tiles(B, F, itemsize)
    tm = auto_tm if tm is None else tm
    tf = auto_tf if tf is None else tf

    grid = (pl.cdiv(B, tm), pl.cdiv(F, tf))        # reduction (F) axis last

    out = pl.pallas_call(
        _make_kernel(F),
        out_shape=jax.ShapeDtypeStruct((B, 1), jnp.float32),
        grid_spec=pltpu.PrefetchScalarGridSpec(
            num_scalar_prefetch=0,
            grid=grid,
            in_specs=[
                # Dominant HBM stream: double-buffered x tiles, native dtype.
                pl.BlockSpec((tm, tf), lambda i, k: (i, k)),
                # Weight row: resident when F fits, streamed along k otherwise.
                pl.BlockSpec((1, tf), lambda i, k: (0, k)),
                # Bias scalar in SMEM.
                pl.BlockSpec(memory_space=pltpu.MemorySpace.SMEM),
            ],
            out_specs=pl.BlockSpec((tm, 1), lambda i, k: (i, 0)),
            scratch_shapes=[pltpu.VMEM((tm, 1), jnp.float32)],
        ),
        compiler_params=pltpu.CompilerParams(
            dimension_semantics=("parallel", "arbitrary"),
            vmem_limit_bytes=32 * 1024 * 1024,     # covers v5e's 16 MiB default
        ),
        cost_estimate=pl.CostEstimate(
            flops=2 * B * F,
            transcendentals=B,
            bytes_accessed=B * F * itemsize + 4 * (F + B),
        ),
    )(x, w, b)
    return out


if __name__ == "__main__":
    key = jax.random.PRNGKey(0)
    k_x, k_w, k_b, k_x2 = jax.random.split(key, 4)

    # Case 1: f32 input, batch NOT a multiple of the tile -> multi-step
    # "parallel" grid with a ragged last batch block (masked output writes).
    B, F = 40, 32
    x = jax.random.normal(k_x, (B, F), dtype=jnp.float32)
    bound = 1.0 / (F ** 0.5)
    weight = jax.random.uniform(k_w, (1, F), minval=-bound, maxval=bound,
                                dtype=jnp.float32)
    bias = jax.random.uniform(k_b, (1,), minval=-bound, maxval=bound,
                              dtype=jnp.float32)

    y = logreg_forward(x, weight, bias, tm=16)          # grid = (3, 1)
    jax.block_until_ready(y)
    y_ref = jax.nn.sigmoid(x @ weight.T + bias)
    assert y.shape == (B, 1)
    assert jnp.allclose(y, y_ref, atol=1e-5), "case 1 mismatch vs reference"

    # Case 2: bf16 input streamed in native dtype + tiled feature axis with a
    # ragged last F block (exercises accumulator, lane mask, in-kernel upcast).
    B2, F2 = 24, 300
    x2 = jax.random.normal(k_x2, (B2, F2), dtype=jnp.float32).astype(jnp.bfloat16)
    bound2 = 1.0 / (F2 ** 0.5)
    w2 = jax.random.uniform(k_w, (1, F2), minval=-bound2, maxval=bound2,
                            dtype=jnp.float32)
    b2 = jax.random.uniform(k_b, (1,), minval=-bound2, maxval=bound2,
                            dtype=jnp.float32)

    y2 = logreg_forward(x2, w2, b2, tf=128)             # grid = (1, 3)
    jax.block_until_ready(y2)
    y2_ref = jax.nn.sigmoid(x2.astype(jnp.float32) @ w2.T + b2)
    assert y2.shape == (B2, 1)
    assert jnp.allclose(y2, y2_ref, atol=1e-5), "case 2 mismatch vs reference"

    print("KERNEL_OK")
</pallas_src>

<mosaic_0001>
module attributes {stable_mosaic.version = 11 : i64} {
  func.func @kernel(%arg0: i32, %arg1: i32, %arg2: memref<16x32xf32, #tpu.memory_space<vmem>>, %arg3: memref<1x32xf32, #tpu.memory_space<vmem>>, %arg4: memref<1x1xf32, #tpu.memory_space<smem>>, %arg5: memref<16x1xf32, #tpu.memory_space<vmem>>, %arg6: memref<16x1xf32, #tpu.memory_space<vmem>>) attributes {dimension_semantics = [#tpu.dimension_semantics<parallel>, #tpu.dimension_semantics<arbitrary>], iteration_bounds = array<i64: 3, 1>, scalar_prefetch = 0 : i64, scratch_operands = 1 : i64, tpu.core_type = #tpu.core_type<tc>, window_params = [{transform_indices = @transform_0, window_bounds = array<i64: 16, 32>}, {transform_indices = @transform_1, window_bounds = array<i64: 1, 32>}, {transform_indices = @transform_2, window_bounds = array<i64: 1, 1>}, {transform_indices = @transform_3, window_bounds = array<i64: 16, 1>}]} {
    %c0_i32 = arith.constant 0 : i32
    %0 = arith.cmpi eq, %arg1, %c0_i32 : i32
    %1 = arith.extui %0 : i1 to i32
    %c0_i32_0 = arith.constant 0 : i32
    %2 = arith.cmpi ne, %1, %c0_i32_0 : i32
    scf.if %2 {
      %cst_10 = arith.constant 0.000000e+00 : f32
      %15 = vector.broadcast %cst_10 : f32 to vector<16x1xf32>
      %c0_11 = arith.constant 0 : index
      %c0_12 = arith.constant 0 : index
      %16 = vector.load %arg6[%c0_11, %c0_12] : memref<16x1xf32, #tpu.memory_space<vmem>>, vector<16x1xf32>
      tpu.vector_store %arg6[%c0_11, %c0_12], %15 {strides = array<i32>} : memref<16x1xf32, #tpu.memory_space<vmem>>, vector<16x1xf32>,
    } else {
    }
    %c0 = arith.constant 0 : index
    %c0_1 = arith.constant 0 : index
    %3 = vector.load %arg2[%c0, %c0_1] : memref<16x32xf32, #tpu.memory_space<vmem>>, vector<16x32xf32>
    %c0_2 = arith.constant 0 : index
    %c0_3 = arith.constant 0 : index
    %4 = vector.load %arg3[%c0_2, %c0_3] : memref<1x32xf32, #tpu.memory_space<vmem>>, vector<1x32xf32>
    %5 = vector.broadcast %4 : vector<1x32xf32> to vector<16x32xf32>
    %6 = arith.mulf %3, %5 : vector<16x32xf32>
    %c0_4 = arith.constant 0 : index
    %c0_5 = arith.constant 0 : index
    %7 = vector.load %arg6[%c0_4, %c0_5] : memref<16x1xf32, #tpu.memory_space<vmem>>, vector<16x1xf32>
    %cst = arith.constant dense<0.000000e+00> : vector<16xf32>
    %8 = vector.multi_reduction <add>, %6, %cst [1] : vector<16x32xf32> to vector<16xf32>
    %9 = vector.shape_cast %8 : vector<16xf32> to vector<16x1xf32>
    %10 = arith.addf %7, %9 : vector<16x1xf32>
    %c0_6 = arith.constant 0 : index
    %c0_7 = arith.constant 0 : index
    %11 = vector.load %arg6[%c0_6, %c0_7] : memref<16x1xf32, #tpu.memory_space<vmem>>, vector<16x1xf32>
    tpu.vector_store %arg6[%c0_6, %c0_7], %10 {strides = array<i32>} : memref<16x1xf32, #tpu.memory_space<vmem>>, vector<16x1xf32>,
    %c0_i32_8 = arith.constant 0 : i32
    %12 = arith.cmpi eq, %arg1, %c0_i32_8 : i32
    %13 = arith.extui %12 : i1 to i32
    %c0_i32_9 = arith.constant 0 : i32
    %14 = arith.cmpi ne, %13, %c0_i32_9 : i32
    scf.if %14 {
      %c0_10 = arith.constant 0 : index
      %c0_11 = arith.constant 0 : index
      %15 = vector.load %arg6[%c0_10, %c0_11] : memref<16x1xf32, #tpu.memory_space<vmem>>, vector<16x1xf32>
      %c0_12 = arith.constant 0 : index
      %c0_13 = arith.constant 0 : index
      %16 = memref.load %arg4[%c0_12, %c0_13] : memref<1x1xf32, #tpu.memory_space<smem>>
      %17 = vector.broadcast %16 : f32 to vector<16x1xf32>
      %18 = arith.addf %15, %17 : vector<16x1xf32>
      %19 = arith.negf %18 : vector<16x1xf32>
      %20 = math.exp %19 : vector<16x1xf32>
      %cst_14 = arith.constant 1.000000e+00 : f32
      %21 = vector.broadcast %cst_14 : f32 to vector<16x1xf32>
      %22 = arith.addf %21, %20 : vector<16x1xf32>
      %23 = arith.divf %21, %22 : vector<16x1xf32>
      %c0_15 = arith.constant 0 : index
      %c0_16 = arith.constant 0 : index
      %24 = vector.load %arg5[%c0_15, %c0_16] : memref<16x1xf32, #tpu.memory_space<vmem>>, vector<16x1xf32>
      tpu.vector_store %arg5[%c0_15, %c0_16], %23 {strides = array<i32>} : memref<16x1xf32, #tpu.memory_space<vmem>>, vector<16x1xf32>,
    } else {
    }
    return
  }
  func.func @transform_0(%arg0: i32, %arg1: i32) -> (i32, i32) {
    %c0_i32 = arith.constant 0 : i32
    return %arg0, %arg1 : i32, i32
  }
  func.func @transform_1(%arg0: i32, %arg1: i32) -> (i32, i32) {
    %c0_i32 = arith.constant 0 : i32
    %c0_i32_0 = arith.constant 0 : i32
    return %c0_i32, %arg1 : i32, i32
  }
  func.func @transform_2(%arg0: i32, %arg1: i32) -> (i32, i32) {
    %c0_i32 = arith.constant 0 : i32
    %c0_i32_0 = arith.constant 0 : i32
    %c0_i32_1 = arith.constant 0 : i32
    return %c0_i32, %c0_i32_0 : i32, i32
  }
  func.func @transform_3(%arg0: i32, %arg1: i32) -> (i32, i32) {
    %c0_i32 = arith.constant 0 : i32
    %c0_i32_0 = arith.constant 0 : i32
    return %arg0, %c0_i32 : i32, i32
  }
}

</mosaic_0001>

<bundles_post_ra>
// kernel: logreg_forward.1
= control target key start
LH: loop header
LB: loop body
LE: loop exit
PB: predicated region body
PF: predicated region fallthrough
CT: control target
= control target key end

     0   :  { %s935_s0 = inlined_call_operand.vmem [shape: f32[40,32], index: 0, kind: input, shape index: {}]   ;;  %s936_s1 = inlined_call_operand.vmem [shape: f32[1,32], index: 1, kind: input, shape index: {}]   ;;  %s937_s2 = inlined_call_operand.<no memory space> [shape: f32[1,1], index: 2, kind: input, shape index: {}]   ;;  %s938_s3 = inlined_call_operand.vmem [shape: f32[40,1], index: 3, kind: output, shape index: {}]  }
   0x1   :  { %8 = sst [smem:[#allocation3]] %s937_s2 }
   0x2   :  { %s824_s14 = smov 0   ;;  %s826_s15 = smov 0  }
   0x3   :  { %s828_s16 = smov 0   ;;  %s830_s17 = smov 0  }
   0x4   :  { %s832_s18 = smov 0  }
   0x5 LB: > { %s551_s2 = sadd.s32 4294967295, %s766_s18   ;;  %s26_s19 = sadd.s32 1, %s762_s17  ;;  %s766_s18 = sphi %s832_s18, %s14_s18   ;;  %s762_s17 = sphi %s830_s17, %s943_s17   ;;  %s758_s16 = sphi %s828_s16, %s942_s16   ;;  %s754_s15 = sphi %s826_s15, %s941_s15   ;;  %s750_s14 = sphi %s824_s14, %s940_s14  }
   0x6   : > { %p28_p0 = scmp.ge.s32.totalorder %s26_s19, 3  ;;  %s108_s20 = sadd.s32 1, %s754_s15 }
   0x7   : > { %p118_p1 = scmp.ne.s32.totalorder %s754_s15, %s750_s14  ;;  %p119_p2 = scmp.eq.s32.totalorder %s551_s2, 2 }
   0x8   : > { %s945_s19 = smov (%p28_p0, %s26_s19), 0  ;;  %p556_p4 = scmp.ge.s32.totalorder %s766_s18, 1 }
   0x9   : > { %p856_p3 = por %p119_p2, %p118_p1  ;;  %s105_s22 = ssub.s32 %s762_s17, %s945_s19 }
   0xa   : > { %p172_p5 = scmp.lt.s32.totalorder %s766_s18, 4  ;;  %p106_p6 = scmp.eq.s32.totalorder %s105_s22, 0 }
   0xc   : > { %p173_p7 = pnand %p556_p4, %p172_p5 }
   0xd   : > { %s865_s23 = scalar_select %p106_p6, %s754_s15, %s108_s20  }
   0xe   : > { %176 = sbr.rel (%p173_p7) target bundleno = 231 (0xe7), region = 32  ;;  %s868_s24 = sshll.u32 (!%p173_p7), %s758_s16, 1 }
   0xf   : > { %p210_p8 = scmp.lt.s32.totalorder (!%p173_p7), %s868_s24, 4  ;;  %s264_s5 = sld [smem:[#allocation3]] (!%p173_p7) }
  0x10   : > { %s202_s6 = sand.u32 (!%p173_p7), 1, %s750_s14  }
  0x11   : > { %s557_s7 = sshll.u32 (!%p173_p7), %s202_s6, 4 }
  0x12   : > { %s883_s8 = scalar_lea.vmem (!%p173_p7), [#allocation4], %s557_s7  }
  0x13   : > { %vm234_vm0 = vcmask 7168   ;;  %v800_v0 = vmov 0.0   ;;  %s211_s25 = scalar_select %p210_p8, %s868_s24, 4  ;;  %v687_v1 = vld [vmem:[%s936_s1] ss:$0 sm:$0xff]  ;;  %vm247_vm1 = vcmask 261120  }
  0x14   : > { %235 = vst.msk [vmem:[#allocation2] sm:$0xff] %vm234_vm0, %v800_v0  ;;  %s316_s9 = ssub.s32 (%p856_p3), 5, %s868_s24  ;;  %s579_s10 = sshll.u32 (%p856_p3), %s758_s16, 4 }
  0x15   : > { %236 = vst.msk [vmem:[#allocation2 + $0x8] sm:$0xff] %vm234_vm0, %v800_v0  ;;  %s559_s28 = sshll.u32 %s211_s25, 3  ;;  %v265_v12 = vstv %s264_s5  ;;  %p317_p9 = scmp.lt.s32.totalorder (%p856_p3), %s316_s9, 2 }
  0x16   : > { %s216_s4 = scalar_lea.vmem %s935_s0, %s559_s28  ;;  %s896_s13 = scalar_lea.vmem (%p856_p3), %s938_s3, %s579_s10  }
  0x17   : > { %v237_v2 = vld [vmem:[%s216_s4] sm:$0xff]  ;;  %v238_v4 = vld [vmem:[%s216_s4 + $0x8] sm:$0xff] }
  0x18   : > { %v243_v3 = vmul.f32 %v687_v1, %v237_v2  ;;  %v244_v6 = vmul.f32 %v687_v1, %v238_v4 }
  0x1a   : > { %v248_v5 = vsel %vm247_vm1, %v243_v3, 0.0  ;;  %v251_v7 = vsel %vm247_vm1, %v244_v6, 0.0 }
  0x1b   : > { %249 = vadd.xlane.f32.xlu0 %v248_v5  ;;  %v245_v8 = vld [vmem:[#allocation2] sm:$0xff] }
  0x1c   : > { %v246_v11 = vld [vmem:[#allocation2 + $0x8] sm:$0xff] }
  0x23   : > { %252 = vadd.xlane.f32.xlu0 %v251_v7 }
  0x8e   : > { %v250_v9 = vpop.xlane.xlu0 %249 }
  0x8f   : > { %v254_v10 = vadd.f32 %v250_v9, %v245_v8 }
  0x91   : > { %257 = vst.msk [vmem:[#allocation2] sm:$0xff] %vm234_vm0, %v254_v10 }
  0x96   : > { %v253_v13 = vpop.xlane.xlu0 %252 }
  0x97   : > { %v255_v14 = vadd.f32 %v253_v13, %v246_v11 }
  0x98   : > { %v262_v15 = vld [vmem:[#allocation2] sm:$0xff] }
  0x99   : > { %v266_v16 = vadd.f32 %v265_v12, %v262_v15  ;;  %258 = vst.msk [vmem:[#allocation2 + $0x8] sm:$0xff] %vm234_vm0, %v255_v14 }
  0x9b   : > { %v560_v17 = vmul.f32 -1.442695, %v266_v16 }
  0x9d   : > { %688 = vpow2.f32 %v560_v17 }
  0xa0   : > { %v263_v18 = vld [vmem:[#allocation2 + $0x8] sm:$0xff] }
  0xa1   : > { %v267_v19 = vadd.f32 %v265_v12, %v263_v18 }
  0xa3   : > { %v689_v20 = vpop.eup %688  ;;  %v561_v21 = vmul.f32 -1.442695, %v267_v19 }
  0xa4   : > { %v274_v22 = vadd.f32 1.0, %v689_v20 }
  0xa5   : > { %690 = vpow2.f32 %v561_v21 }
  0xa6   : > { %692 = vrcp.f32 %v274_v22  ;;  %v287_v28 = vand.u32 2147483648, %v274_v22  ;;  %v285_v30 = vand.u32 2147483647, %v274_v22  ;;  %vm281_vm3 = vweird.f32 %v274_v22 }
  0xa8   : > { %v288_v33 = vor.u32 1.1754944e-38, %v287_v28  ;;  %vm286_vm5 = vcmp.eq.f32.partialorder %v285_v30, 8.507059e+37 }
  0xab   : > { %v691_v23 = vpop.eup %690 }
  0xac   : > { %v693_v24 = vpop.eup %692  ;;  %v275_v25 = vadd.f32 1.0, %v691_v23 }
  0xad   : > { %v277_v26 = vmul.f32 %v693_v24, %v274_v22  ;;  %vm282_vm2 = vweird.f32 %v693_v24 }
  0xae   : > { %694 = vrcp.f32 %v275_v25  ;;  %vm283_vm4 = vmor %vm281_vm3, %vm282_vm2  ;;  %v302_v38 = vand.u32 2147483648, %v275_v25  ;;  %v300_v40 = vand.u32 2147483647, %v275_v25  ;;  %vm296_vm7 = vweird.f32 %v275_v25 }
  0xaf   : > { %v278_v27 = vsub.f32 1.0, %v277_v26 }
  0xb0   : > { %v303_v42 = vor.u32 1.1754944e-38, %v302_v38  ;;  %vm301_vm9 = vcmp.eq.f32.partialorder %v300_v40, 8.507059e+37 }
  0xb1   : > { %v279_v29 = vmul.f32 %v693_v24, %v278_v27 }
  0xb3   : > { %v280_v31 = vadd.f32 %v693_v24, %v279_v29 }
  0xb4   : > { %v695_v32 = vpop.eup %694 }
  0xb5   : > { %v284_v34 = vsel %vm283_vm4, %v693_v24, %v280_v31  ;;  %v292_v35 = vmul.f32 %v695_v32, %v275_v25  ;;  %vm297_vm6 = vweird.f32 %v695_v32 }
  0xb6   : > { %v289_v36 = vsel %vm286_vm5, %v288_v33, %v284_v34  ;;  %vm298_vm8 = vmor %vm296_vm7, %vm297_vm6 }
  0xb7   : > { %306 = vst.msk [vmem:[%s883_s8] sm:$0xff] %vm234_vm0, %v289_v36  ;;  %v293_v37 = vsub.f32 1.0, %v292_v35 }
  0xb9   : > { %v294_v39 = vmul.f32 %v695_v32, %v293_v37 }
  0xbb   : > { %v295_v41 = vadd.f32 %v695_v32, %v294_v39  ;;  %314 = sbr.rel (!%p856_p3) target bundleno = 231 (0xe7), region = 44 }
  0xbd   : > { %v299_v43 = vsel %vm298_vm8, %v695_v32, %v295_v41 }
  0xbe   : > { %v304_v44 = vsel %vm301_vm9, %v303_v42, %v299_v43 }
  0xbf   : > { %307 = vst.msk [vmem:[%s883_s8 + $0x8] sm:$0xff] %vm234_vm0, %v304_v44 }
  0xc0   : > { %s947_s9 = smov (!%p317_p9, %s316_s9), 2 }
  0xc1   : > { %s564_s14 = sshll.u32 %s947_s9, 3 }
  0xc2   : > { %p567_p10 = scmp.eq.s32.totalorder %s564_s14, 0 }
  0xc3   : > { %s902_s2 = sshrl.u32 (!%p567_p10), %s947_s9, 1 }
  0xc4   : > { %325 = sbr.rel (%p567_p10) target bundleno = 231 (0xe7), region = 48  ;;  %p568_p11 = scmp.le.s32.totalorder (!%p567_p10), %s902_s2, 0 }
  0xc9   : > { %490 = sbr.rel (%p568_p11) target bundleno = 214 (0xd6), region = 127  ;;  %s768_s16 = smov (!%p568_p11), %s896_s13  }
  0xca   : > { %s772_s20 = smov (!%p568_p11), %s883_s8   ;;  %s776_s21 = smov (!%p568_p11), 0  }
  0xcb   : > { %s780_s22 = smov (!%p568_p11), 0  }
  0xce LB: >> { %v390_v45 = vld [vmem:[%s774_s20] sm:$0xff]  ;;  %v392_v46 = vld [vmem:[%s774_s20 + $0x8] sm:$0xff]  ;;  %s394_s24 = sadd.s32 1, %s778_s21  ;;  %s384_s22 = sadd.s32 1, %s782_s22   ;;  %s782_s22 = sphi %s780_s22, %s384_s22   ;;  %s778_s21 = sphi %s776_s21, %s777_s21   ;;  %s774_s20 = sphi %s772_s20, %s399_s20   ;;  %s770_s16 = sphi %s768_s16, %s400_s16  }
  0xcf   : >> { %391 = vst [vmem:[%s770_s16] sm:$0xff] %v390_v45  ;;  %p395_p12 = scmp.ge.s32.totalorder %s394_s24, %s902_s2  ;;  %p383_p13 = scmp.ge.s32.totalorder %s384_s22, %s902_s2 }
  0xd0   : >> { %393 = vst [vmem:[%s770_s16 + $0x8] sm:$0xff] %v392_v46 }
  0xd1   : >> { %s949_s24 = smov (%p395_p12, %s394_s24), 0  ;;  %386 = sbr.rel (!%p383_p13) target bundleno = 206 (0xce), region = 133 }
  0xd2   : >> { %s569_s25 = sshll.u32 %s949_s24, 4  ;;  %s777_s21 = smov %s949_s24  }
  0xd3   : >> { %s399_s20 = scalar_lea.vmem %s883_s8, %s569_s25 [#allocation4]   ;;  %s400_s16 = scalar_lea.vmem %s896_s13, %s569_s25  }
  0xd6 PF: > { %s912_s26 = sand.u32 1, %s947_s9   ;;  %s580_s27 = sshll.u32 %s902_s2, 4 }
  0xd7   : > { %s405_s28 = scalar_lea.vmem %s883_s8, %s580_s27 [#allocation4]   ;;  %s407_s29 = scalar_lea.vmem %s896_s13, %s580_s27  }
  0xd8   : > { %p574_p0 = scmp.le.s32.totalorder %s912_s26, 0 }
  0xd9   : > { %s784_s30 = smov (!%p574_p0), %s407_s29   ;;  %s788_s4 = smov (!%p574_p0), %s405_s28  }
  0xda   : > { %504 = sbr.rel (%p574_p0) target bundleno = 231 (0xe7), region = 138  ;;  %s792_s5 = smov (!%p574_p0), 0  }
  0xdb   : > { %s796_s6 = smov (!%p574_p0), 0  }
  0xdf LB: >> { %v417_v47 = vld [vmem:[%s790_s4] sm:$0xff]  ;;  %s419_s7 = sadd.s32 1, %s794_s5  ;;  %s411_s6 = sadd.s32 1, %s798_s6   ;;  %s798_s6 = sphi %s796_s6, %s411_s6   ;;  %s794_s5 = sphi %s792_s5, %s793_s5   ;;  %s790_s4 = sphi %s788_s4, %s424_s4   ;;  %s786_s30 = sphi %s784_s30, %s425_s30  }
  0xe0   : >> { %418 = vst [vmem:[%s786_s30] sm:$0xff] %v417_v47  ;;  %p420_p1 = scmp.ge.s32.totalorder %s419_s7, %s912_s26  ;;  %p410_p2 = scmp.ge.s32.totalorder %s411_s6, %s912_s26 }
  0xe2   : >> { %s951_s7 = smov (%p420_p1, %s419_s7), 0  ;;  %413 = sbr.rel (!%p410_p2) target bundleno = 223 (0xdf), region = 144 }
  0xe3   : >> { %s575_s8 = sshll.u32 %s951_s7, 3  ;;  %s793_s5 = smov %s951_s7  }
  0xe4   : >> { %s424_s4 = scalar_lea.vmem %s405_s28, %s575_s8 [#allocation4]   ;;  %s425_s30 = scalar_lea.vmem %s407_s29, %s575_s8  }
  0xe7 PF: > { %s14_s18 = sadd.s32 1, %s766_s18   ;;  %s940_s14 = smov %s754_s15 }
  0xe8   : > { %p11_p3 = scmp.ge.s32.totalorder %s14_s18, 5   ;;  %s941_s15 = smov %s865_s23 }
  0xe9   : > { %s942_s16 = smov %s762_s17  ;;  %s943_s17 = smov %s945_s19 }
  0xea   :  { %13 = sbr.rel (!%p11_p3) target bundleno = 5 (0x5), region = 155 }

</bundles_post_ra>
